<compile_context>
chip_gen: v7x
topology: tpu7x:2x2x1
jax: 0.10.0
libtpu: 0.0.40
codegen_flags: <defaults>
</compile_context>

<pallas_src>
import functools

import jax
import jax.numpy as jnp
import numpy as np
from jax.experimental import pallas as pl
from jax.experimental.pallas import tpu as pltpu

LANE = 128


def _round_up(x, m):
    return ((x + m - 1) // m) * m


# -----------------------------------------------------------------------------
# One-time preprocessing (outside the jitted per-call path)
# -----------------------------------------------------------------------------
def prepare_params(weight, bias):
    """Zero-pad output dim to a lane multiple; weight -> bf16, bias -> f32."""
    d, h = weight.shape
    h_pad = _round_up(h, LANE)
    w_pad = jnp.zeros((d, h_pad), jnp.bfloat16).at[:, :h].set(
        weight.astype(jnp.bfloat16))
    b_pad = jnp.zeros((1, h_pad), jnp.float32)
    if bias is not None:
        b_pad = b_pad.at[0, :h].set(bias.astype(jnp.float32).reshape(-1))
    return w_pad, b_pad


def prepare_adjacency(adjacency, *, tn, tk):
    """Persistent adjacency preprocessing (runs once per graph):
      * zero-pad N to a multiple of lcm(tn, tk) (handles awkward N)
      * cast to bf16 ONCE (not per forward call)
      * build block-sparse metadata: for each tn-row tile, the compacted list
        of nonzero (tn, tk) column-block indices plus its length. Padded list
        slots repeat the last valid index so the pipeline skips their DMA.
    """
    n = adjacency.shape[0]
    step = int(np.lcm(tn, tk))
    n_pad = _round_up(n, step)
    # TODO(synk): for very large graphs build this metadata blockwise from CSR
    # instead of materialising a dense padded host copy.
    a = np.zeros((n_pad, n_pad), np.float32)
    a[:n, :n] = np.asarray(adjacency, dtype=np.float32)

    rows, cols = n_pad // tn, n_pad // tk
    blk_mass = np.abs(a).reshape(rows, tn, cols, tk).sum(axis=(1, 3))
    blk_mask = blk_mass > 0.0
    counts = blk_mask.sum(axis=1).astype(np.int32)
    max_blk = max(1, int(counts.max()))

    bcols = np.zeros((rows, max_blk), np.int32)
    for i in range(rows):
        nz = np.nonzero(blk_mask[i])[0].astype(np.int32)
        if nz.size == 0:
            nz = np.zeros((1,), np.int32)   # dummy valid block; count==0 skips compute
        bcols[i, : nz.size] = nz
        bcols[i, nz.size:] = nz[-1]         # repeat last -> padded steps skip DMA

    adj_bf16 = jnp.asarray(a, dtype=jnp.bfloat16)   # persistent bf16 copy
    return adj_bf16, jnp.asarray(bcols), jnp.asarray(counts)


# -----------------------------------------------------------------------------
# Kernels
# -----------------------------------------------------------------------------
def transform_kernel(x_ref, w_ref, s_ref):
    """S[tile] = X[tile] @ W  (bf16 operands, f32 accumulate, bf16 store)."""
    s_ref[...] = jnp.dot(x_ref[...], w_ref[...],
                         preferred_element_type=jnp.float32).astype(s_ref.dtype)


def aggregate_kernel(bcols_ref, bcnt_ref, adj_ref, s_ref, b_ref, out_ref, acc_ref):
    """out[row tile] = sum over nonzero K blocks of A[tile, blk] @ S[blk] + b."""
    i = pl.program_id(0)
    k = pl.program_id(1)

    @pl.when(k == 0)
    def _init():
        acc_ref[...] = jnp.zeros_like(acc_ref)

    @pl.when(k < bcnt_ref[i])            # skip padded (all-zero) block slots
    def _accumulate():
        acc_ref[...] += jnp.dot(adj_ref[...], s_ref[...],
                                preferred_element_type=jnp.float32)

    @pl.when(k == pl.num_programs(1) - 1)
    def _finalize():
        out_ref[...] = (acc_ref[...] + b_ref[...]).astype(out_ref.dtype)


# -----------------------------------------------------------------------------
# Jitted forward (per-call path): only X changes call-to-call
# -----------------------------------------------------------------------------
@functools.partial(jax.jit,
                   static_argnames=("tm", "tn", "tk", "n_nodes", "out_dim"))
def gcn_forward(adj_bf16, block_cols, block_counts, x, w_pad, b_pad, *,
                tm, tn, tk, n_nodes, out_dim):
    n_pad = adj_bf16.shape[0]
    d = x.shape[1]
    h_pad = w_pad.shape[1]
    assert n_pad % tm == 0 and n_pad % tn == 0 and n_pad % tk == 0

    # Per-call X prep is tiny (N*D): pad rows to n_pad, cast to bf16.
    x_bf16 = x.astype(jnp.bfloat16)
    if n_pad != n_nodes:
        x_bf16 = jnp.zeros((n_pad, d), jnp.bfloat16).at[:n_nodes].set(x_bf16)

    # ----------------- pass 1: S = X @ W (row-tiled over nodes) --------------
    vmem1 = 2 * tm * d * 2 + 2 * d * h_pad * 2 + 2 * tm * h_pad * 2
    vmem1 = int(min(44 << 20, max(16 << 20, 4 * vmem1)))
    s_bf16 = pl.pallas_call(
        transform_kernel,
        out_shape=jax.ShapeDtypeStruct((n_pad, h_pad), jnp.bfloat16),
        grid_spec=pltpu.PrefetchScalarGridSpec(
            num_scalar_prefetch=0,
            grid=(n_pad // tm,),
            in_specs=[
                pl.BlockSpec((tm, d), lambda i: (i, 0)),       # X row tile
                pl.BlockSpec((d, h_pad), lambda i: (0, 0)),    # W (resident)
            ],
            out_specs=pl.BlockSpec((tm, h_pad), lambda i: (i, 0)),
        ),
        compiler_params=pltpu.CompilerParams(
            dimension_semantics=("parallel",),
            vmem_limit_bytes=vmem1,
        ),
    )(x_bf16, w_pad)

    # -------- pass 2: out = A @ S + b (row tiles x nonzero K blocks) ---------
    rows = n_pad // tn
    max_blk = block_cols.shape[1]
    vmem2 = (2 * tn * tk * 2          # A blocks (bf16, double-buffered)
             + 2 * tk * h_pad * 2     # S blocks (bf16, double-buffered)
             + 2 * tn * h_pad * 4     # output tiles (f32, double-buffered)
             + tn * h_pad * 4         # f32 accumulator scratch
             + 2 * h_pad * 4)         # bias
    vmem2 = int(min(44 << 20, max(16 << 20, 4 * vmem2)))
    out_pad = pl.pallas_call(
        aggregate_kernel,
        out_shape=jax.ShapeDtypeStruct((n_pad, h_pad), jnp.float32),
        grid_spec=pltpu.PrefetchScalarGridSpec(
            num_scalar_prefetch=2,    # block_cols, block_counts live in SMEM
            grid=(rows, max_blk),
            in_specs=[
                # A block (i, bcols[i, k]) -- only nonzero blocks are fetched
                pl.BlockSpec((tn, tk), lambda i, k, bc, cnt: (i, bc[i, k])),
                # matching S block
                pl.BlockSpec((tk, h_pad), lambda i, k, bc, cnt: (bc[i, k], 0)),
                # bias (resident)
                pl.BlockSpec((1, h_pad), lambda i, k, bc, cnt: (0, 0)),
            ],
            out_specs=pl.BlockSpec((tn, h_pad), lambda i, k, bc, cnt: (i, 0)),
            scratch_shapes=[pltpu.VMEM((tn, h_pad), jnp.float32)],
        ),
        compiler_params=pltpu.CompilerParams(
            dimension_semantics=("parallel", "arbitrary"),
            vmem_limit_bytes=vmem2,
        ),
    )(block_cols, block_counts, adj_bf16, s_bf16, b_pad)

    return out_pad[:n_nodes, :out_dim]


# -----------------------------------------------------------------------------
# Demo helpers
# -----------------------------------------------------------------------------
def kaiming_uniform(key, in_dim, out_dim):
    """torch.nn.init.kaiming_uniform_ on a (in_dim, out_dim) tensor:
    fan_in = size(1) = out_dim, gain = sqrt(2) -> bound = sqrt(6 / out_dim)."""
    bound = float(np.sqrt(6.0 / out_dim))
    return jax.random.uniform(key, (in_dim, out_dim), dtype=jnp.float32,
                              minval=-bound, maxval=bound)


def make_community_adjacency(key, n, n_comm=4, p_intra=0.05, p_cross=0.02):
    """Block-structured sparse graph: ~5%-dense within communities plus a few
    edges between communities 0 and 1, symmetrized, self loops, D^-1/2(A+I)D^-1/2.
    The block structure makes some (tn, tk) tiles exactly zero, exercising the
    block-skip path."""
    assert n % n_comm == 0
    c = n // n_comm
    keys = jax.random.split(key, n_comm + 1)
    a = jnp.zeros((n, n), jnp.float32)
    for ci in range(n_comm):
        blk = (jax.random.uniform(keys[ci], (c, c)) < p_intra).astype(jnp.float32)
        a = a.at[ci * c:(ci + 1) * c, ci * c:(ci + 1) * c].set(blk)
    cross = (jax.random.uniform(keys[-1], (c, c)) < p_cross).astype(jnp.float32)
    a = a.at[0:c, c:2 * c].set(cross)
    a = jnp.maximum(a, a.T)                   # symmetrize
    a = a + jnp.eye(n, dtype=jnp.float32)     # self loops
    deg = jnp.sum(a, axis=1)
    d_inv_sqrt = 1.0 / jnp.sqrt(deg)
    return a * d_inv_sqrt[:, None] * d_inv_sqrt[None, :]


if __name__ == "__main__":
    # GraphConvolution(input_dim=32, output_dim=16) on a 512-node graph.
    # Small tiles (128) so the demo exercises multi-tile grids, the K-tiled
    # accumulator, and the block-skip path (per-row-tile counts differ).
    # For large graphs use e.g. tm=tn=tk=512 (still < 2 MiB of VMEM per pass).
    N, D, H = 512, 32, 16
    TM = TN = TK = 128

    root = jax.random.PRNGKey(0)
    k_adj, k_x, k_w = jax.random.split(root, 3)

    adjacency = make_community_adjacency(k_adj, N)
    x = jax.random.normal(k_x, (N, D), dtype=jnp.float32)
    weight = kaiming_uniform(k_w, D, H)          # init.kaiming_uniform_
    bias = jnp.zeros((H,), dtype=jnp.float32)    # init.zeros_

    # One-time, persistent preprocessing (outside the per-call jitted path).
    adj_bf16, bcols, bcnt = prepare_adjacency(adjacency, tn=TN, tk=TK)
    w_pad, b_pad = prepare_params(weight, bias)

    out = gcn_forward(adj_bf16, bcols, bcnt, x, w_pad, b_pad,
                      tm=TM, tn=TN, tk=TK, n_nodes=N, out_dim=H)
    out = jax.block_until_ready(out)

    # Pure-JAX f32 reference of the PyTorch forward: A @ (X @ W) + b.
    ref = adjacency @ (x @ weight) + bias[None, :]
    # bf16 operands throughout (f32 accumulate) -> ~1% element error.
    np.testing.assert_allclose(np.asarray(out), np.asarray(ref),
                               rtol=3e-2, atol=3e-2)
    assert out.shape == (N, H)
    # Sanity: block compaction really skips zero adjacency blocks in this demo.
    assert int(np.asarray(bcnt).sum()) < (adj_bf16.shape[0] // TN) * (adj_bf16.shape[0] // TK)

    print("KERNEL_OK")
</pallas_src>

<mosaic_0001>
module attributes {stable_mosaic.version = 11 : i64} {
  func.func @transform_kernel(%arg0: i32, %arg1: memref<128x32xbf16, #tpu.memory_space<vmem>>, %arg2: memref<32x128xbf16, #tpu.memory_space<vmem>>, %arg3: memref<128x128xbf16, #tpu.memory_space<vmem>>) attributes {dimension_semantics = [#tpu.dimension_semantics<parallel>], iteration_bounds = array<i64: 4>, scalar_prefetch = 0 : i64, scratch_operands = 0 : i64, tpu.core_type = #tpu.core_type<tc>, window_params = [{transform_indices = @transform_0, window_bounds = array<i64: 128, 32>}, {pipeline_mode = #tpu.pipeline_mode<synchronous>, transform_indices = @transform_1, window_bounds = array<i64: 32, 128>}, {transform_indices = @transform_2, window_bounds = array<i64: 128, 128>}]} {
    %c0 = arith.constant 0 : index
    %c0_0 = arith.constant 0 : index
    %0 = vector.load %arg1[%c0, %c0_0] : memref<128x32xbf16, #tpu.memory_space<vmem>>, vector<128x32xbf16>
    %c0_1 = arith.constant 0 : index
    %c0_2 = arith.constant 0 : index
    %1 = vector.load %arg2[%c0_1, %c0_2] : memref<32x128xbf16, #tpu.memory_space<vmem>>, vector<32x128xbf16>
    %cst = arith.constant dense<0.000000e+00> : vector<128x128xf32>
    %2 = tpu.matmul %0, %1, %cst {dimension_numbers = #tpu.dot_dimension_numbers<[1], [0], [0], [1], [0, 0, 1, 1], [], []>} : vector<128x32xbf16>, vector<32x128xbf16>, vector<128x128xf32> -> vector<128x128xf32>
    %3 = arith.truncf %2 : vector<128x128xf32> to vector<128x128xbf16>
    %c0_3 = arith.constant 0 : index
    %c0_4 = arith.constant 0 : index
    %4 = vector.load %arg3[%c0_3, %c0_4] : memref<128x128xbf16, #tpu.memory_space<vmem>>, vector<128x128xbf16>
    tpu.vector_store %arg3[%c0_3, %c0_4], %3 {strides = array<i32>} : memref<128x128xbf16, #tpu.memory_space<vmem>>, vector<128x128xbf16>,
    return
  }
  func.func @transform_0(%arg0: i32) -> (i32, i32) {
    %c0_i32 = arith.constant 0 : i32
    %c0_i32_0 = arith.constant 0 : i32
    return %arg0, %c0_i32 : i32, i32
  }
  func.func @transform_1(%arg0: i32) -> (i32, i32) {
    %c0_i32 = arith.constant 0 : i32
    %c0_i32_0 = arith.constant 0 : i32
    %c0_i32_1 = arith.constant 0 : i32
    return %c0_i32, %c0_i32_0 : i32, i32
  }
  func.func @transform_2(%arg0: i32) -> (i32, i32) {
    %c0_i32 = arith.constant 0 : i32
    %c0_i32_0 = arith.constant 0 : i32
    return %arg0, %c0_i32 : i32, i32
  }
}

module attributes {stable_mosaic.version = 11 : i64} {
  func.func @aggregate_kernel(%arg0: i32, %arg1: i32, %arg2: memref<4x2xi32, #tpu.memory_space<smem>>, %arg3: memref<4xi32, #tpu.memory_space<smem>>, %arg4: memref<128x128xbf16, #tpu.memory_space<vmem>>, %arg5: memref<128x128xbf16, #tpu.memory_space<vmem>>, %arg6: memref<1x128xf32, #tpu.memory_space<vmem>>, %arg7: memref<128x128xf32, #tpu.memory_space<vmem>>, %arg8: memref<128x128xf32, #tpu.memory_space<vmem>>) attributes {dimension_semantics = [#tpu.dimension_semantics<parallel>, #tpu.dimension_semantics<arbitrary>], iteration_bounds = array<i64: 4, 2>, scalar_prefetch = 2 : i64, scratch_operands = 1 : i64, tpu.core_type = #tpu.core_type<tc>, window_params = [{transform_indices = @transform_0, window_bounds = array<i64: 128, 128>}, {transform_indices = @transform_1, window_bounds = array<i64: 128, 128>}, {pipeline_mode = #tpu.pipeline_mode<synchronous>, transform_indices = @transform_2, window_bounds = array<i64: 1, 128>}, {transform_indices = @transform_3, window_bounds = array<i64: 128, 128>}]} {
    %c0_i32 = arith.constant 0 : i32
    %0 = arith.cmpi eq, %arg1, %c0_i32 : i32
    %1 = arith.extui %0 : i1 to i32
    %c0_i32_0 = arith.constant 0 : i32
    %2 = arith.cmpi ne, %1, %c0_i32_0 : i32
    scf.if %2 {
      %cst = arith.constant 0.000000e+00 : f32
      %11 = vector.broadcast %cst : f32 to vector<128x128xf32>
      %c0 = arith.constant 0 : index
      %c0_3 = arith.constant 0 : index
      %12 = vector.load %arg8[%c0, %c0_3] : memref<128x128xf32, #tpu.memory_space<vmem>>, vector<128x128xf32>
      tpu.vector_store %arg8[%c0, %c0_3], %11 {strides = array<i32>} : memref<128x128xf32, #tpu.memory_space<vmem>>, vector<128x128xf32>,
    } else {
    }
    %3 = arith.index_cast %arg0 : i32 to index
    %4 = memref.load %arg3[%3] : memref<4xi32, #tpu.memory_space<smem>>
    %5 = arith.cmpi slt, %arg1, %4 : i32
    %6 = arith.extui %5 : i1 to i32
    %c0_i32_1 = arith.constant 0 : i32
    %7 = arith.cmpi ne, %6, %c0_i32_1 : i32
    scf.if %7 {
      %c0 = arith.constant 0 : index
      %c0_3 = arith.constant 0 : index
      %11 = vector.load %arg8[%c0, %c0_3] : memref<128x128xf32, #tpu.memory_space<vmem>>, vector<128x128xf32>
      %c0_4 = arith.constant 0 : index
      %c0_5 = arith.constant 0 : index
      %12 = vector.load %arg4[%c0_4, %c0_5] : memref<128x128xbf16, #tpu.memory_space<vmem>>, vector<128x128xbf16>
      %c0_6 = arith.constant 0 : index
      %c0_7 = arith.constant 0 : index
      %13 = vector.load %arg5[%c0_6, %c0_7] : memref<128x128xbf16, #tpu.memory_space<vmem>>, vector<128x128xbf16>
      %cst = arith.constant dense<0.000000e+00> : vector<128x128xf32>
      %14 = tpu.matmul %12, %13, %cst {dimension_numbers = #tpu.dot_dimension_numbers<[1], [0], [0], [1], [0, 0, 1, 1], [], []>} : vector<128x128xbf16>, vector<128x128xbf16>, vector<128x128xf32> -> vector<128x128xf32>
      %15 = arith.addf %11, %14 : vector<128x128xf32>
      %c0_8 = arith.constant 0 : index
      %c0_9 = arith.constant 0 : index
      %16 = vector.load %arg8[%c0_8, %c0_9] : memref<128x128xf32, #tpu.memory_space<vmem>>, vector<128x128xf32>
      tpu.vector_store %arg8[%c0_8, %c0_9], %15 {strides = array<i32>} : memref<128x128xf32, #tpu.memory_space<vmem>>, vector<128x128xf32>,
    } else {
    }
    %c1_i32 = arith.constant 1 : i32
    %8 = arith.cmpi eq, %arg1, %c1_i32 : i32
    %9 = arith.extui %8 : i1 to i32
    %c0_i32_2 = arith.constant 0 : i32
    %10 = arith.cmpi ne, %9, %c0_i32_2 : i32
    scf.if %10 {
      %c0 = arith.constant 0 : index
      %c0_3 = arith.constant 0 : index
      %11 = vector.load %arg8[%c0, %c0_3] : memref<128x128xf32, #tpu.memory_space<vmem>>, vector<128x128xf32>
      %c0_4 = arith.constant 0 : index
      %c0_5 = arith.constant 0 : index
      %12 = vector.load %arg6[%c0_4, %c0_5] : memref<1x128xf32, #tpu.memory_space<vmem>>, vector<1x128xf32>
      %13 = vector.broadcast %12 : vector<1x128xf32> to vector<128x128xf32>
      %14 = arith.addf %11, %13 : vector<128x128xf32>
      %c0_6 = arith.constant 0 : index
      %c0_7 = arith.constant 0 : index
      %15 = vector.load %arg7[%c0_6, %c0_7] : memref<128x128xf32, #tpu.memory_space<vmem>>, vector<128x128xf32>
      tpu.vector_store %arg7[%c0_6, %c0_7], %14 {strides = array<i32>} : memref<128x128xf32, #tpu.memory_space<vmem>>, vector<128x128xf32>,
    } else {
    }
    return
  }
  func.func @transform_0(%arg0: i32, %arg1: i32, %arg2: memref<4x2xi32, #tpu.memory_space<smem>>, %arg3: memref<4xi32, #tpu.memory_space<smem>>) -> (i32, i32) {
    %0 = arith.index_cast %arg0 : i32 to index
    %1 = arith.index_cast %arg1 : i32 to index
    %2 = memref.load %arg2[%0, %1] : memref<4x2xi32, #tpu.memory_space<smem>>
    %c0_i32 = arith.constant 0 : i32
    return %arg0, %2 : i32, i32
  }
  func.func @transform_1(%arg0: i32, %arg1: i32, %arg2: memref<4x2xi32, #tpu.memory_space<smem>>, %arg3: memref<4xi32, #tpu.memory_space<smem>>) -> (i32, i32) {
    %0 = arith.index_cast %arg0 : i32 to index
    %1 = arith.index_cast %arg1 : i32 to index
    %2 = memref.load %arg2[%0, %1] : memref<4x2xi32, #tpu.memory_space<smem>>
    %c0_i32 = arith.constant 0 : i32
    %c0_i32_0 = arith.constant 0 : i32
    return %2, %c0_i32 : i32, i32
  }
  func.func @transform_2(%arg0: i32, %arg1: i32, %arg2: memref<4x2xi32, #tpu.memory_space<smem>>, %arg3: memref<4xi32, #tpu.memory_space<smem>>) -> (i32, i32) {
    %c0_i32 = arith.constant 0 : i32
    %c0_i32_0 = arith.constant 0 : i32
    %c0_i32_1 = arith.constant 0 : i32
    return %c0_i32, %c0_i32_0 : i32, i32
  }
  func.func @transform_3(%arg0: i32, %arg1: i32, %arg2: memref<4x2xi32, #tpu.memory_space<smem>>, %arg3: memref<4xi32, #tpu.memory_space<smem>>) -> (i32, i32) {
    %c0_i32 = arith.constant 0 : i32
    %c0_i32_0 = arith.constant 0 : i32
    return %arg0, %c0_i32 : i32, i32
  }
}

</mosaic_0001>

<bundles_post_ra>
// kernel: gcn_forward.2
= control target key start
LH: loop header
LB: loop body
LE: loop exit
PB: predicated region body
PF: predicated region fallthrough
CT: control target
= control target key end

     0   :  { %s661_s9 = smov 0   ;;  %s695_s0 = inlined_call_operand.vmem [shape: bf16[512,32], index: 0, kind: input, shape index: {}]   ;;  %s696_s1 = inlined_call_operand.vmem [shape: bf16[32,128], index: 1, kind: input, shape index: {}]   ;;  %s697_s2 = inlined_call_operand.vmem [shape: bf16[512,128], index: 2, kind: output, shape index: {}]  }
   0x1 LB: > { %s478_s10 = sadd.s32 4294967295, %s644_s9   ;;  %p482_p0 = scmp.ge.s32.totalorder %s644_s9, 1  ;;  %s644_s9 = sphi %s661_s9, %s12_s9  }
   0x2   : > { %p113_p1 = scmp.lt.s32.totalorder %s644_s9, 5 }
   0x4   : > { %p114_p2 = pnand %p482_p0, %p113_p1 }
   0x5   : > { %v628_v0 = vld [vmem:[%s696_s1] sm:$0xff] (!%p114_p2)   ;;  %s483_s13 = sshll.u32 (!%p114_p2), %s478_s10, 4  ;;  %v629_v1 = vld [vmem:[%s696_s1 + $0x8] sm:$0xff] (!%p114_p2)   ;;  %vm220_vm0 = vcmask (!%p114_p2), 261120  }
   0x6   : > { %117 = sbr.rel (%p114_p2) target bundleno = 245 (0xf5), region = 28  ;;  %p136_p3 = scmp.lt.s32.totalorder (!%p114_p2), %s483_s13, 63  ;;  %596 = vmatprep.subr.bf16.mxu0 (!%p114_p2), %v628_v0  ;;  %616 = vmatprep.subr.bf16.mxu1 (!%p114_p2), %v628_v0 }
   0x7   : > { %597 = vmatpush3.bf16.msra.mxu0 (!%p114_p2), %v628_v0  ;;  %618 = vmatpush3.bf16.msra.mxu1 (!%p114_p2), %v628_v0 }
   0x8   : > { %598 = vmatprep.subr.bf16.mxu0 (!%p114_p2), %v629_v1  ;;  %617 = vmatprep.subr.bf16.mxu1 (!%p114_p2), %v629_v1 }
   0xb   : > { %599 = vmatpush3.bf16.msra.mxu0 (!%p114_p2), %v629_v1  ;;  %619 = vmatpush3.bf16.msra.mxu1 (!%p114_p2), %v629_v1 }
   0xd   : > { %s699_s13 = smov (!%p136_p3, %s483_s13), 63 }
   0xe   : > { %s484_s16 = sshll.u32 %s699_s13, 2 }
   0xf   : > { %s139_s19 = scalar_lea.vmem %s695_s0, %s484_s16  ;;  %s145_s22 = scalar_lea.vmem %s697_s2, %s484_s16 }
  0x10   : > { %v630_v2 = vld [vmem:[%s139_s19] sm:$0xff]   ;;  %v632_v4 = vld [vmem:[%s139_s19 + $0x8] sm:$0xff]   ;;  %v634_v6 = vld [vmem:[%s139_s19 + $0x10] sm:$0xff]  }
  0x11   : > { %v631_v3 = vld [vmem:[%s139_s19 + $0x20] sm:$0xff]   ;;  %600 = vmatprep.mubr.msk.bf16.mxu0 %vm220_vm0, %v630_v2  ;;  %v633_v5 = vld [vmem:[%s139_s19 + $0x28] sm:$0xff]   ;;  %v635_v7 = vld [vmem:[%s139_s19 + $0x30] sm:$0xff]  }
  0x12   : > { %608 = vmatprep.mubr.msk.bf16.mxu1 %vm220_vm0, %v631_v3  ;;  %601 = vmatmul.mubr.msk.bf16.vlgmr.msra.gmra.mrb[0].mxu0 %vm220_vm0, %v632_v4  ;;  %v636_v8 = vld [vmem:[%s139_s19 + $0x18] sm:$0xff]  }
  0x13   : > { %609 = vmatmul.mubr.msk.bf16.vlgmr.msra.gmra.mrb[0].mxu1 %vm220_vm0, %v633_v5  ;;  %604 = vmatprep.mubr.msk.bf16.mxu0 %vm220_vm0, %v634_v6  ;;  %v637_v9 = vld [vmem:[%s139_s19 + $0x38] sm:$0xff]  }
  0x14   : > { %612 = vmatprep.mubr.msk.bf16.mxu1 %vm220_vm0, %v635_v7 }
  0x1a   : > { %605 = vmatmul.mubr.msk.bf16.gmra.mrb[4].mxu0 %vm220_vm0, %v636_v8 }
  0x1b   : > { %613 = vmatmul.mubr.msk.bf16.gmra.mrb[4].mxu1 %vm220_vm0, %v637_v9 }
  0xe5   : > { %v602_v10 = vpop.f32.mrb[0].mxu0 }
  0xe6   : > { %v610_v11 = vpop.f32.mrb[0].mxu1  ;;  %v279_v12 = vpop.f32.mrb[1].mxu0 }
  0xe7   : > { %v311_v13 = vpop.f32.mrb[1].mxu1  ;;  %v603_v14 = vpop.f32.mrb[2].mxu0 }
  0xe8   : > { %v547_v15 = vpack.c.bf16 %v603_v14, %v602_v10  ;;  %v611_v16 = vpop.f32.mrb[2].mxu1  ;;  %v282_v17 = vpop.f32.mrb[3].mxu0 }
  0xe9   : > { %v567_v18 = vpack.c.bf16 %v611_v16, %v610_v11  ;;  %v542_v19 = vpack.c.bf16 %v282_v17, %v279_v12  ;;  %v314_v20 = vpop.f32.mrb[3].mxu1 }
  0xea   : > { %579 = vst [vmem:[%s145_s22 + $0x8] sm:$0xff] %v547_v15   ;;  %v562_v21 = vpack.c.bf16 %v314_v20, %v311_v13 }
  0xeb   : > { %583 = vst [vmem:[%s145_s22 + $0x28] sm:$0xff] %v567_v18   ;;  %543 = vst [vmem:[%s145_s22] sm:$0xff] %v542_v19  }
  0xec   : > { %582 = vst [vmem:[%s145_s22 + $0x20] sm:$0xff] %v562_v21  }
  0xed   : > { %v606_v22 = vpop.f32.mrb[4].mxu0 }
  0xee   : > { %v614_v23 = vpop.f32.mrb[4].mxu1  ;;  %v295_v24 = vpop.f32.mrb[5].mxu0 }
  0xef   : > { %v327_v25 = vpop.f32.mrb[5].mxu1  ;;  %v607_v26 = vpop.f32.mrb[6].mxu0 }
  0xf0   : > { %v557_v27 = vpack.c.bf16 %v607_v26, %v606_v22  ;;  %v615_v28 = vpop.f32.mrb[6].mxu1  ;;  %v298_v29 = vpop.f32.mrb[7].mxu0 }
  0xf1   : > { %v577_v30 = vpack.c.bf16 %v615_v28, %v614_v23  ;;  %v552_v31 = vpack.c.bf16 %v298_v29, %v295_v24  ;;  %v330_v32 = vpop.f32.mrb[7].mxu1 }
  0xf2   : > { %581 = vst [vmem:[%s145_s22 + $0x18] sm:$0xff] %v557_v27   ;;  %v572_v33 = vpack.c.bf16 %v330_v32, %v327_v25 }
  0xf3   : > { %585 = vst [vmem:[%s145_s22 + $0x38] sm:$0xff] %v577_v30   ;;  %580 = vst [vmem:[%s145_s22 + $0x10] sm:$0xff] %v552_v31  }
  0xf4   : > { %584 = vst [vmem:[%s145_s22 + $0x30] sm:$0xff] %v572_v33  }
  0xf5 PF: > { %s12_s9 = sadd.s32 1, %s644_s9  }
  0xf6   : > { %p9_p4 = scmp.ge.s32.totalorder %s12_s9, 6  }
  0xf8   :  { %11 = sbr.rel (!%p9_p4) target bundleno = 1 (0x1), region = 58 }

// kernel: gcn_forward.3
= control target key start
LH: loop header
LB: loop body
LE: loop exit
PB: predicated region body
PF: predicated region fallthrough
CT: control target
= control target key end

     0   :  { %s1322_s0 = inlined_call_operand.vmem [shape: s32[4,2], index: 0, kind: input, shape index: {}]   ;;  %s1323_s2 = inlined_call_operand.vmem [shape: bf16[512,512], index: 2, kind: input, shape index: {}]   ;;  %s1324_s3 = inlined_call_operand.vmem [shape: bf16[512,128], index: 3, kind: input, shape index: {}]   ;;  %s1325_s4 = inlined_call_operand.vmem [shape: f32[1,128], index: 4, kind: input, shape index: {}]   ;;  %s1326_s5 = inlined_call_operand.vmem [shape: f32[512,128], index: 5, kind: output, shape index: {}]   ;;  %s1327_s1 = inlined_call_operand.vmem [shape: s32[4], index: 1, kind: input, shape index: {}]  }
   0x1   :  { %s10_s20 = sshll.u32 %s1322_s0, 4  ;;  %s14_s23 = sshll.u32 %s1327_s1, 4  ;;  %s11_s20 = int_to_ptr.vmem [resolvable:$true] %s10_s20  ;;  %s15_s23 = int_to_ptr.vmem [resolvable:$true] %s14_s23 }
   0x2   :  { %s1041_s24 = scalar_lea.vmem %s11_s20, 64  ;;  %p1046_p1 = scmp.lt.s32.totalorder %s11_s20, %s11_s20 }
   0x3   :  { %p1042_p0 = scmp.ne.s32.totalorder %s11_s20, %s1041_s24  ;;  %p1047_p2 = scmp.lt.s32.totalorder %s1041_s24, %s1041_s24 }
   0x5   :  { %p1048_p3 = por %p1047_p2, %p1046_p1 }
   0x7   :  { %p1049_p4 = pnand %p1048_p3, %p1042_p0 }
   0x9   :  { %1052 = shalt.err (!%p1049_p4)  }
   0xa   :  { %s1123_s25 = smov [#allocation4]   ;;  %s1053_s26 = scalar_lea.vmem %s15_s23, 16 }
   0xb   :  { %13 = dma.vmem_to_smem %s11_s20, 64, %s1123_s25, [#allocation3] }
   0xc   :  { %p1054_p5 = scmp.ne.s32.totalorder %s15_s23, %s1053_s26  ;;  %p1058_p6 = scmp.lt.s32.totalorder %s15_s23, %s15_s23 }
   0xd   :  { %p1059_p7 = scmp.lt.s32.totalorder %s1053_s26, %s1053_s26 }
   0xf   :  { %p1060_p8 = por %p1059_p7, %p1058_p6 }
  0x11   :  { %p1061_p9 = pnand %p1060_p8, %p1054_p5 }
  0x13   :  { %1064 = shalt.err (!%p1061_p9)  }
  0x14   :  { %s1124_s0 = smov [#allocation5]  }
  0x15   :  { %17 = dma.vmem_to_smem %s15_s23, 16, %s1124_s0, [#allocation3] }
  0x16   :  { %1093 = dma.done.wait [#allocation3], 80 }
  0x17   :  { %1094 = vsyncadd [#allocation3], 4294967216 }
  0x18   :  { %19 = sfence }
  0x19   :  { %s1162_s1 = smov 0   ;;  %s1164_s27 = smov 0  }
  0x1a   :  { %s1166_s28 = smov 0   ;;  %s1168_s29 = smov 0  }
  0x1b   :  { %s1170_s30 = smov 0   ;;  %s1172_s6 = smov 0  }
  0x1c   :  { %s1174_s7 = smov 0  }
  0x1d LB: > { %s34_s8 = sadd.s32 1, %s1113_s30  ;;  %s37_s9 = sadd.s32 1, %s1117_s6  ;;  %s1121_s7 = sphi %s1174_s7, %s25_s7   ;;  %s1117_s6 = sphi %s1172_s6, %s1333_s6   ;;  %s1113_s30 = sphi %s1170_s30, %s1332_s30   ;;  %s1109_s29 = sphi %s1168_s29, %s1331_s29   ;;  %s1105_s28 = sphi %s1166_s28, %s1330_s28   ;;  %s1101_s27 = sphi %s1164_s27, %s1329_s27   ;;  %s1097_s1 = sphi %s1162_s1, %s1328_s1  }
  0x1e   : > { %p35_p10 = scmp.ge.s32.totalorder %s34_s8, 2  ;;  %s41_s10 = sshra.s32 %s1113_s30, 7 }
  0x1f   : > { %s43_s11 = sadd.s32 %s1117_s6, %s41_s10  ;;  %s46_s12 = sand.u32 127, %s1113_s30 }
  0x20   : > { %s1335_s8 = smov (%p35_p10, %s34_s8), 0  ;;  %s1337_s9 = smov (!%p35_p10, %s37_s9), %s1117_s6 }
  0x21   : > { %s861_s13 = sshll.u32 %s43_s11, 7  ;;  %p39_p11 = scmp.ge.s32.totalorder %s1337_s9, 4 }
  0x22   : > { %s47_s14 = sadd.s32 %s861_s13, %s46_s12  ;;  %s49_s15 = sshra.s32 %s1335_s8, 7 }
  0x23   : > { %s1339_s9 = smov (%p39_p11, %s1337_s9), 0  ;;  %s54_s16 = sand.u32 127, %s1335_s8 }
  0x24   : > { %p69_p12 = scmp.ne.s32.totalorder %s1101_s27, %s1097_s1  ;;  %s48_s17 = sld [smem:[#allocation4 + %s47_s14]] }
  0x25   : > { %s51_s18 = sadd.s32 %s49_s15, %s1339_s9  ;;  %p70_p13 = scmp.eq.s32.totalorder %s1121_s7, 0 }
  0x26   : > { %s862_s19 = sshll.u32 %s51_s18, 7  ;;  %s57_s22 = ssub.s32 %s1117_s6, %s1339_s9 }
  0x27   : > { %s55_s20 = sadd.s32 %s862_s19, %s54_s16  ;;  %p71_p0 = por %p70_p13, %p69_p12 }
  0x28   : > { %s56_s21 = sld [smem:[#allocation4 + %s55_s20]]  ;;  %s62_s25 = sadd.s32 1, %s1101_s27 }
  0x29   : > { %p866_p2 = scmp.ge.s32.totalorder %s1121_s7, 8 }
  0x2c   : > { %187 = sbr.rel (%p866_p2) target bundleno = 72 (0x48), region = 20 }
  0x2e   : > { %s58_s23 = ssub.s32 %s48_s17, %s56_s21 }
  0x2f   : > { %s59_s24 = sor.u32 %s58_s23, %s57_s22 }
  0x30   : > { %p60_p1 = scmp.eq.s32.totalorder %s59_s24, 0 }
  0x32   : > { %s1217_s26 = scalar_select %p60_p1, %s1101_s27, %s62_s25  }
  0x33   : > { %190 = sbr.rel (!%p71_p0) target bundleno = 72 (0x48), region = 24  ;;  %s202_s0 = sld [smem:[#allocation4 + %s47_s14]] (%p71_p0) }
  0x34   : > { %s192_s10 = sand.u32 (%p71_p0), 1, %s1101_s27   ;;  %s901_s11 = sshll.u32 (%p71_p0), %s1117_s6, 6 }
  0x35   : > { %s867_s12 = sshll.u32 (%p71_p0), %s192_s10, 6 }
  0x36   : > { %s194_s14 = scalar_lea.vmem (%p71_p0), [#allocation6], %s867_s12 }
  0x39   : > { %s205_s13 = sadd.s32 (%p71_p0), %s901_s11, %s202_s0 }
  0x3a   : > { %s871_s15 = sshll.u32 %s205_s13, 2 }
  0x3b   : > { %s1225_s17 = scalar_lea.vmem %s1323_s2, %s871_s15 }
  0x3c   : > { %v223_v0 = vld [vmem:[%s1225_s17] sm:$0xf]  ;;  %v225_v1 = vld [vmem:[%s1225_s17 + $0x10] sm:$0xf] }
  0x3d   : > { %v227_v2 = vld [vmem:[%s1225_s17 + $0x20] sm:$0xf]  ;;  %224 = vst [vmem:[%s194_s14] sm:$0xf] %v223_v0  ;;  %226 = vst [vmem:[%s194_s14 + $0x4] sm:$0xf] %v225_v1 }
  0x3e   : > { %228 = vst [vmem:[%s194_s14 + $0x8] sm:$0xf] %v227_v2  ;;  %v229_v3 = vld [vmem:[%s1225_s17 + $0x30] sm:$0xf]  ;;  %v231_v4 = vld [vmem:[%s1225_s17 + $0x40] sm:$0xf] }
  0x3f   : > { %v233_v5 = vld [vmem:[%s1225_s17 + $0x50] sm:$0xf]  ;;  %230 = vst [vmem:[%s194_s14 + $0xc] sm:$0xf] %v229_v3  ;;  %232 = vst [vmem:[%s194_s14 + $0x10] sm:$0xf] %v231_v4 }
  0x40   : > { %234 = vst [vmem:[%s194_s14 + $0x14] sm:$0xf] %v233_v5  ;;  %v235_v6 = vld [vmem:[%s1225_s17 + $0x60] sm:$0xf]  ;;  %v237_v7 = vld [vmem:[%s1225_s17 + $0x70] sm:$0xf] }
  0x41   : > { %v239_v8 = vld [vmem:[%s1225_s17 + $0x80] sm:$0xf]  ;;  %236 = vst [vmem:[%s194_s14 + $0x18] sm:$0xf] %v235_v6  ;;  %238 = vst [vmem:[%s194_s14 + $0x1c] sm:$0xf] %v237_v7 }
  0x42   : > { %240 = vst [vmem:[%s194_s14 + $0x20] sm:$0xf] %v239_v8  ;;  %v241_v9 = vld [vmem:[%s1225_s17 + $0x90] sm:$0xf]  ;;  %v243_v10 = vld [vmem:[%s1225_s17 + $0xa0] sm:$0xf] }
  0x43   : > { %v245_v11 = vld [vmem:[%s1225_s17 + $0xb0] sm:$0xf]  ;;  %242 = vst [vmem:[%s194_s14 + $0x24] sm:$0xf] %v241_v9  ;;  %244 = vst [vmem:[%s194_s14 + $0x28] sm:$0xf] %v243_v10 }
  0x44   : > { %246 = vst [vmem:[%s194_s14 + $0x2c] sm:$0xf] %v245_v11  ;;  %v247_v12 = vld [vmem:[%s1225_s17 + $0xc0] sm:$0xf]  ;;  %v249_v13 = vld [vmem:[%s1225_s17 + $0xd0] sm:$0xf] }
  0x45   : > { %v251_v14 = vld [vmem:[%s1225_s17 + $0xe0] sm:$0xf]  ;;  %248 = vst [vmem:[%s194_s14 + $0x30] sm:$0xf] %v247_v12  ;;  %250 = vst [vmem:[%s194_s14 + $0x34] sm:$0xf] %v249_v13 }
  0x46   : > { %252 = vst [vmem:[%s194_s14 + $0x38] sm:$0xf] %v251_v14  ;;  %v253_v15 = vld [vmem:[%s1225_s17 + $0xf0] sm:$0xf] }
  0x47   : > { %254 = vst [vmem:[%s194_s14 + $0x3c] sm:$0xf] %v253_v15 }
  0x48 PF: > { %p872_p3 = scmp.ge.s32.totalorder %s1121_s7, 1  ;;  %p333_p4 = scmp.lt.s32.totalorder %s1121_s7, 9 }
  0x4a   : > { %p334_p5 = pnand %p872_p3, %p333_p4 }
  0x4b   : > { %s340_s19 = sand.u32 (!%p334_p5), 1, %s1097_s1   ;;  %s385_s20 = sshra.s32 (!%p334_p5), %s1105_s28, 7 }
  0x4c   : > { %337 = sbr.rel (%p334_p5) target bundleno = 371 (0x173), region = 69  ;;  %s873_s21 = sshll.u32 (!%p334_p5), %s340_s19, 6 }
  0x4d   : > { %s387_s22 = sadd.s32 (!%p334_p5), %s1109_s29, %s385_s20  ;;  %s390_s24 = sand.u32 (!%p334_p5), 127, %s1105_s28 }
  0x4e   : > { %s874_s23 = sshll.u32 (!%p334_p5), %s387_s22, 7  ;;  %s877_s25 = sshll.u32 (!%p334_p5), %s1109_s29, 4 }
  0x4f   : > { %s391_s0 = sadd.s32 (!%p334_p5), %s874_s23, %s390_s24  ;;  %p408_p6 = scmp.lt.s32.totalorder (!%p334_p5), %s877_s25, 63 }
  0x50   : > { %s392_s10 = sld [smem:[#allocation4 + %s391_s0]] (!%p334_p5)  ;;  %s1260_s19 = scalar_lea.vmem (!%p334_p5), [#allocation6], %s873_s21 }
  0x51   : > { %p879_p8 = scmp.ne.s32.totalorder (!%p334_p5), %s1105_s28, 0 }
  0x53   : > { %s1341_s25 = smov (!%p408_p6, %s877_s25), 63  ;;  %v1125_v16 = vmov (!%p879_p8), 0.0  }
  0x54   : > { %s878_s11 = sshll.u32 %s1341_s25, 3  ;;  %418 = vst [vmem:[#allocation2] sm:$0xff] (!%p879_p8), %v1125_v16  ;;  %419 = vst [vmem:[#allocation2 + $0x8] sm:$0xff] (!%p879_p8), %v1125_v16 }
  0x55   : > { %s1253_s15 = scalar_lea.vmem %s1326_s5, %s878_s11  ;;  %417 = sbr.rel (%p879_p8) target bundleno = 92 (0x5c), region = 77  ;;  %420 = vst [vmem:[#allocation2 + $0x10] sm:$0xff] (!%p879_p8), %v1125_v16  ;;  %421 = vst [vmem:[#allocation2 + $0x18] sm:$0xff] (!%p879_p8), %v1125_v16 }
  0x56   : > { %s875_s16 = sshll.u32 %s392_s10, 4  ;;  %422 = vst [vmem:[#allocation2 + $0x20] sm:$0xff] (!%p879_p8), %v1125_v16  ;;  %423 = vst [vmem:[#allocation2 + $0x28] sm:$0xff] (!%p879_p8), %v1125_v16 }
  0x57   : > { %p394_p7 = scmp.lt.s32.totalorder %s875_s16, 63  ;;  %424 = vst [vmem:[#allocation2 + $0x30] sm:$0xff] (!%p879_p8), %v1125_v16  ;;  %425 = vst [vmem:[#allocation2 + $0x38] sm:$0xff] (!%p879_p8), %v1125_v16 }
  0x58   : > { %426 = vst [vmem:[#allocation2 + $0x40] sm:$0xff] (!%p879_p8), %v1125_v16  ;;  %427 = vst [vmem:[#allocation2 + $0x48] sm:$0xff] (!%p879_p8), %v1125_v16 }
  0x59   : > { %s1343_s16 = smov (!%p394_p7, %s875_s16), 63  ;;  %428 = vst [vmem:[#allocation2 + $0x50] sm:$0xff] (!%p879_p8), %v1125_v16  ;;  %429 = vst [vmem:[#allocation2 + $0x58] sm:$0xff] (!%p879_p8), %v1125_v16 }
  0x5a   : > { %s876_s1 = sshll.u32 %s1343_s16, 2  ;;  %430 = vst [vmem:[#allocation2 + $0x60] sm:$0xff] (!%p879_p8), %v1125_v16  ;;  %431 = vst [vmem:[#allocation2 + $0x68] sm:$0xff] (!%p879_p8), %v1125_v16 }
  0x5b   : > { %s1258_s14 = scalar_lea.vmem %s1324_s3, %s876_s1  ;;  %432 = vst [vmem:[#allocation2 + $0x70] sm:$0xff] (!%p879_p8), %v1125_v16  ;;  %433 = vst [vmem:[#allocation2 + $0x78] sm:$0xff] (!%p879_p8), %v1125_v16 }
  0x5c PF: > { %s434_s20 = sld [smem:[#allocation5 + %s1109_s29]] }
  0x62   : > { %p880_p9 = scmp.ge.s32.totalorder %s1105_s28, %s434_s20 }
  0x63   : > { %v1025_v17 = vld [vmem:[%s1258_s14] sm:$0xff] (!%p880_p9)   ;;  %v1026_v18 = vld [vmem:[%s1258_s14 + $0x8] sm:$0xff] (!%p880_p9)   ;;  %v1027_v19 = vld [vmem:[%s1258_s14 + $0x10] sm:$0xff] (!%p880_p9)  }
  0x64   : > { %438 = sbr.rel (%p880_p9) target bundleno = 358 (0x166), region = 81  ;;  %918 = vmatprep.subr.bf16.mxu0 (!%p880_p9), %v1025_v17  ;;  %950 = vmatprep.subr.bf16.mxu1 (!%p880_p9), %v1025_v17  ;;  %v1028_v20 = vld [vmem:[%s1258_s14 + $0x18] sm:$0xff] (!%p880_p9)   ;;  %v1033_v21 = vld [vmem:[%s1260_s19] sm:$0xff] (!%p880_p9)   ;;  %v1030_v24 = vld [vmem:[%s1258_s14 + $0x28] sm:$0xff] (!%p880_p9)  }
  0x65   : > { %919 = vmatpush3.bf16.msra.mxu0 (!%p880_p9), %v1025_v17  ;;  %958 = vmatpush3.bf16.msra.mxu1 (!%p880_p9), %v1025_v17  ;;  %v1034_v22 = vld [vmem:[%s1260_s19 + $0x20] sm:$0xff] (!%p880_p9)   ;;  %v1031_v25 = vld [vmem:[%s1258_s14 + $0x30] sm:$0xff] (!%p880_p9)   ;;  %v1032_v26 = vld [vmem:[%s1258_s14 + $0x38] sm:$0xff] (!%p880_p9)  }
  0x66   : > { %920 = vmatprep.subr.bf16.mxu0 (!%p880_p9), %v1026_v18  ;;  %951 = vmatprep.subr.bf16.mxu1 (!%p880_p9), %v1026_v18  ;;  %v1029_v23 = vld [vmem:[%s1258_s14 + $0x20] sm:$0xff] (!%p880_p9)   ;;  %v1035_v27 = vld [vmem:[%s1260_s19 + $0x8] sm:$0xff] (!%p880_p9)   ;;  %v1037_v29 = vld [vmem:[%s1260_s19 + $0x10] sm:$0xff] (!%p880_p9)  }
  0x67   : > { %934 = vmatprep.mubr.bf16.mxu0 (!%p880_p9), %v1033_v21  ;;  %942 = vmatprep.mubr.bf16.mxu1 (!%p880_p9), %v1034_v22  ;;  %v1036_v28 = vld [vmem:[%s1260_s19 + $0x28] sm:$0xff] (!%p880_p9)   ;;  %v1038_v30 = vld [vmem:[%s1260_s19 + $0x30] sm:$0xff] (!%p880_p9)   ;;  %v1039_v31 = vld [vmem:[%s1260_s19 + $0x18] sm:$0xff] (!%p880_p9)  }
  0x68   : > { %v1040_v32 = vld [vmem:[%s1260_s19 + $0x38] sm:$0xff] (!%p880_p9)   ;;  %v441_v33 = vld [vmem:[#allocation2 + $0x10] sm:$0xff] (!%p880_p9)  ;;  %v439_v35 = vld [vmem:[#allocation2] sm:$0xff] (!%p880_p9) }
  0x69   : > { %921 = vmatpush3.bf16.msra.mxu0 (!%p880_p9), %v1026_v18  ;;  %959 = vmatpush3.bf16.msra.mxu1 (!%p880_p9), %v1026_v18  ;;  %v449_v34 = vld [vmem:[#allocation2 + $0x50] sm:$0xff] (!%p880_p9)  ;;  %v447_v36 = vld [vmem:[#allocation2 + $0x40] sm:$0xff] (!%p880_p9)  ;;  %v442_v39 = vld [vmem:[#allocation2 + $0x18] sm:$0xff] (!%p880_p9) }
  0x6a   : > { %922 = vmatprep.subr.bf16.mxu0 (!%p880_p9), %v1027_v19  ;;  %952 = vmatprep.subr.bf16.mxu1 (!%p880_p9), %v1027_v19  ;;  %v450_v40 = vld [vmem:[#allocation2 + $0x58] sm:$0xff] (!%p880_p9)  ;;  %v440_v45 = vld [vmem:[#allocation2 + $0x8] sm:$0xff] (!%p880_p9)  ;;  %v445_v57 = vld [vmem:[#allocation2 + $0x30] sm:$0xff] (!%p880_p9) }
  0x6b   : > { %v448_v46 = vld [vmem:[#allocation2 + $0x48] sm:$0xff]  ;;  %v453_v58 = vld [vmem:[#allocation2 + $0x70] sm:$0xff]  ;;  %v443_v59 = vld [vmem:[#allocation2 + $0x20] sm:$0xff] }
  0x6c   : > { %v451_v60 = vld [vmem:[#allocation2 + $0x60] sm:$0xff]  ;;  %v446_v63 = vld [vmem:[#allocation2 + $0x38] sm:$0xff]  ;;  %v444_v5 = vld [vmem:[#allocation2 + $0x28] sm:$0xff] }
  0x6d   : > { %923 = vmatpush3.bf16.msra.mxu0 %v1027_v19  ;;  %960 = vmatpush3.bf16.msra.mxu1 %v1027_v19  ;;  %v454_v0 = vld [vmem:[#allocation2 + $0x78] sm:$0xff]  ;;  %v452_v6 = vld [vmem:[#allocation2 + $0x68] sm:$0xff] }
  0x6e   : > { %924 = vmatprep.subr.bf16.mxu0 %v1028_v20  ;;  %953 = vmatprep.subr.bf16.mxu1 %v1028_v20 }
  0x71   : > { %925 = vmatpush3.bf16.msra.mxu0 %v1028_v20  ;;  %961 = vmatpush3.bf16.msra.mxu1 %v1028_v20 }
  0x72   : > { %926 = vmatprep.subr.bf16.mxu0 %v1029_v23  ;;  %954 = vmatprep.subr.bf16.mxu1 %v1029_v23 }
  0x75   : > { %927 = vmatpush3.bf16.msra.mxu0 %v1029_v23  ;;  %962 = vmatpush3.bf16.msra.mxu1 %v1029_v23 }
  0x76   : > { %928 = vmatprep.subr.bf16.mxu0 %v1030_v24  ;;  %955 = vmatprep.subr.bf16.mxu1 %v1030_v24 }
  0x79   : > { %929 = vmatpush3.bf16.msra.mxu0 %v1030_v24  ;;  %963 = vmatpush3.bf16.msra.mxu1 %v1030_v24 }
  0x7a   : > { %930 = vmatprep.subr.bf16.mxu0 %v1031_v25  ;;  %956 = vmatprep.subr.bf16.mxu1 %v1031_v25 }
  0x7d   : > { %931 = vmatpush3.bf16.msra.mxu0 %v1031_v25  ;;  %964 = vmatpush3.bf16.msra.mxu1 %v1031_v25 }
  0x7e   : > { %932 = vmatprep.subr.bf16.mxu0 %v1032_v26  ;;  %957 = vmatprep.subr.bf16.mxu1 %v1032_v26 }
  0x81   : > { %933 = vmatpush3.bf16.msra.mxu0 %v1032_v26  ;;  %965 = vmatpush3.bf16.msra.mxu1 %v1032_v26 }
  0x84   : > { %935 = vmatmul.mubr.bf16.vlgmr.msra.gmra.mrb[0].mxu0 %v1035_v27  ;;  %943 = vmatmul.mubr.bf16.vlgmr.msra.gmra.mrb[0].mxu1 %v1036_v28 }
  0x85   : > { %938 = vmatprep.mubr.bf16.mxu0 %v1037_v29  ;;  %946 = vmatprep.mubr.bf16.mxu1 %v1038_v30 }
  0x8c   : > { %939 = vmatmul.mubr.bf16.gmra.mrb[4].mxu0 %v1039_v31  ;;  %947 = vmatmul.mubr.bf16.gmra.mrb[4].mxu1 %v1040_v32 }
 0x157   : > { %v936_v37 = vpop.f32.mrb[0].mxu0  ;;  %v944_v38 = vpop.f32.mrb[0].mxu1 }
 0x158   : > { %v682_v41 = vadd.f32 %v936_v37, %v441_v33  ;;  %v690_v42 = vadd.f32 %v944_v38, %v449_v34  ;;  %v617_v43 = vpop.f32.mrb[1].mxu0  ;;  %v649_v44 = vpop.f32.mrb[1].mxu1 }
 0x159   : > { %v680_v47 = vadd.f32 %v617_v43, %v439_v35  ;;  %v688_v48 = vadd.f32 %v649_v44, %v447_v36  ;;  %v937_v49 = vpop.f32.mrb[2].mxu0  ;;  %v945_v50 = vpop.f32.mrb[2].mxu1 }
 0x15a   : > { %698 = vst [vmem:[#allocation2 + $0x10] sm:$0xff] %v682_v41  ;;  %706 = vst [vmem:[#allocation2 + $0x50] sm:$0xff] %v690_v42  ;;  %v683_v51 = vadd.f32 %v937_v49, %v442_v39  ;;  %v691_v52 = vadd.f32 %v945_v50, %v450_v40  ;;  %v620_v53 = vpop.f32.mrb[3].mxu0  ;;  %v652_v54 = vpop.f32.mrb[3].mxu1 }
 0x15b   : > { %696 = vst [vmem:[#allocation2] sm:$0xff] %v680_v47  ;;  %704 = vst [vmem:[#allocation2 + $0x40] sm:$0xff] %v688_v48  ;;  %v681_v55 = vadd.f32 %v620_v53, %v440_v45  ;;  %v689_v56 = vadd.f32 %v652_v54, %v448_v46 }
 0x15c   : > { %699 = vst [vmem:[#allocation2 + $0x18] sm:$0xff] %v683_v51  ;;  %707 = vst [vmem:[#allocation2 + $0x58] sm:$0xff] %v691_v52 }
 0x15d   : > { %697 = vst [vmem:[#allocation2 + $0x8] sm:$0xff] %v681_v55  ;;  %705 = vst [vmem:[#allocation2 + $0x48] sm:$0xff] %v689_v56 }
 0x15f   : > { %v940_v61 = vpop.f32.mrb[4].mxu0  ;;  %v948_v62 = vpop.f32.mrb[4].mxu1 }
 0x160   : > { %v686_v1 = vadd.f32 %v940_v61, %v445_v57  ;;  %v694_v2 = vadd.f32 %v948_v62, %v453_v58  ;;  %v633_v3 = vpop.f32.mrb[5].mxu0  ;;  %v665_v4 = vpop.f32.mrb[5].mxu1 }
 0x161   : > { %v684_v7 = vadd.f32 %v633_v3, %v443_v59  ;;  %v692_v8 = vadd.f32 %v665_v4, %v451_v60  ;;  %v941_v9 = vpop.f32.mrb[6].mxu0  ;;  %v949_v10 = vpop.f32.mrb[6].mxu1 }
 0x162   : > { %702 = vst [vmem:[#allocation2 + $0x30] sm:$0xff] %v686_v1  ;;  %710 = vst [vmem:[#allocation2 + $0x70] sm:$0xff] %v694_v2  ;;  %v687_v11 = vadd.f32 %v941_v9, %v446_v63  ;;  %v695_v12 = vadd.f32 %v949_v10, %v454_v0  ;;  %v636_v13 = vpop.f32.mrb[7].mxu0  ;;  %v668_v14 = vpop.f32.mrb[7].mxu1 }
 0x163   : > { %700 = vst [vmem:[#allocation2 + $0x20] sm:$0xff] %v684_v7  ;;  %708 = vst [vmem:[#allocation2 + $0x60] sm:$0xff] %v692_v8  ;;  %v685_v15 = vadd.f32 %v636_v13, %v444_v5  ;;  %v693_v16 = vadd.f32 %v668_v14, %v452_v6 }
 0x164   : > { %703 = vst [vmem:[#allocation2 + $0x38] sm:$0xff] %v687_v11  ;;  %711 = vst [vmem:[#allocation2 + $0x78] sm:$0xff] %v695_v12 }
 0x165   : > { %701 = vst [vmem:[#allocation2 + $0x28] sm:$0xff] %v685_v15  ;;  %709 = vst [vmem:[#allocation2 + $0x68] sm:$0xff] %v693_v16 }
 0x166 PF: > { %p897_p10 = scmp.ne.s32.totalorder %s1105_s28, 1 }
 0x167   : > { %v716_v17 = vld [vmem:[#allocation2] sm:$0xff] (!%p897_p10)  ;;  %v717_v19 = vld [vmem:[#allocation2 + $0x8] sm:$0xff] (!%p897_p10)  ;;  %v718_v22 = vld [vmem:[#allocation2 + $0x10] sm:$0xff] (!%p897_p10) }
 0x168   : > { %715 = sbr.rel (%p897_p10) target bundleno = 371 (0x173), region = 85  ;;  %v898_v18 = vld [vmem:[%s1325_s4] ss:$0 sm:$0xff] (!%p897_p10)  ;;  %v719_v23 = vld [vmem:[#allocation2 + $0x18] sm:$0xff] (!%p897_p10)  ;;  %v725_v35 = vld [vmem:[#allocation2 + $0x48] sm:$0xff] (!%p897_p10) }
 0x169   : > { %v739_v20 = vadd.f32 (!%p897_p10), %v898_v18, %v716_v17  ;;  %v740_v21 = vadd.f32 (!%p897_p10), %v898_v18, %v717_v19  ;;  %v741_v25 = vadd.f32 (!%p897_p10), %v898_v18, %v718_v22  ;;  %v742_v26 = vadd.f32 (!%p897_p10), %v898_v18, %v719_v23  ;;  %v722_v29 = vld [vmem:[#allocation2 + $0x30] sm:$0xff] (!%p897_p10)  ;;  %v724_v34 = vld [vmem:[#allocation2 + $0x40] sm:$0xff] (!%p897_p10)  ;;  %v727_v40 = vld [vmem:[#allocation2 + $0x58] sm:$0xff] (!%p897_p10) }
 0x16a   : > { %v720_v24 = vld [vmem:[#allocation2 + $0x20] sm:$0xff] (!%p897_p10)  ;;  %v745_v32 = vadd.f32 (!%p897_p10), %v898_v18, %v722_v29  ;;  %v726_v36 = vld [vmem:[#allocation2 + $0x50] sm:$0xff] (!%p897_p10)  ;;  %v747_v37 = vadd.f32 (!%p897_p10), %v898_v18, %v724_v34  ;;  %v748_v38 = vadd.f32 (!%p897_p10), %v898_v18, %v725_v35  ;;  %v750_v43 = vadd.f32 (!%p897_p10), %v898_v18, %v727_v40 }
 0x16b   : > { %v743_v27 = vadd.f32 (!%p897_p10), %v898_v18, %v720_v24  ;;  %v723_v30 = vld [vmem:[#allocation2 + $0x38] sm:$0xff] (!%p897_p10)  ;;  %755 = vst [vmem:[%s1253_s15] sm:$0xff] (!%p897_p10), %v739_v20  ;;  %756 = vst [vmem:[%s1253_s15 + $0x8] sm:$0xff] (!%p897_p10), %v740_v21  ;;  %v749_v39 = vadd.f32 (!%p897_p10), %v898_v18, %v726_v36  ;;  %v728_v41 = vld [vmem:[#allocation2 + $0x60] sm:$0xff] (!%p897_p10) }
 0x16c   : > { %v721_v28 = vld [vmem:[#allocation2 + $0x28] sm:$0xff] (!%p897_p10)  ;;  %v746_v33 = vadd.f32 (!%p897_p10), %v898_v18, %v723_v30  ;;  %757 = vst [vmem:[%s1253_s15 + $0x10] sm:$0xff] (!%p897_p10), %v741_v25  ;;  %758 = vst [vmem:[%s1253_s15 + $0x18] sm:$0xff] (!%p897_p10), %v742_v26  ;;  %v751_v44 = vadd.f32 (!%p897_p10), %v898_v18, %v728_v41  ;;  %v730_v46 = vld [vmem:[#allocation2 + $0x70] sm:$0xff] (!%p897_p10) }
 0x16d   : > { %v744_v31 = vadd.f32 (!%p897_p10), %v898_v18, %v721_v28  ;;  %759 = vst [vmem:[%s1253_s15 + $0x20] sm:$0xff] (!%p897_p10), %v743_v27  ;;  %v729_v42 = vld [vmem:[#allocation2 + $0x68] sm:$0xff] (!%p897_p10)  ;;  %761 = vst [vmem:[%s1253_s15 + $0x30] sm:$0xff] (!%p897_p10), %v745_v32  ;;  %v731_v47 = vld [vmem:[#allocation2 + $0x78] sm:$0xff] (!%p897_p10)  ;;  %v753_v48 = vadd.f32 (!%p897_p10), %v898_v18, %v730_v46 }
 0x16e   : > { %762 = vst [vmem:[%s1253_s15 + $0x38] sm:$0xff] (!%p897_p10), %v746_v33  ;;  %v752_v45 = vadd.f32 (!%p897_p10), %v898_v18, %v729_v42  ;;  %763 = vst [vmem:[%s1253_s15 + $0x40] sm:$0xff] (!%p897_p10), %v747_v37  ;;  %v754_v49 = vadd.f32 (!%p897_p10), %v898_v18, %v731_v47 }
 0x16f   : > { %760 = vst [vmem:[%s1253_s15 + $0x28] sm:$0xff] %v744_v31  ;;  %764 = vst [vmem:[%s1253_s15 + $0x48] sm:$0xff] %v748_v38 }
 0x170   : > { %765 = vst [vmem:[%s1253_s15 + $0x50] sm:$0xff] %v749_v39  ;;  %766 = vst [vmem:[%s1253_s15 + $0x58] sm:$0xff] %v750_v43 }
 0x171   : > { %767 = vst [vmem:[%s1253_s15 + $0x60] sm:$0xff] %v751_v44  ;;  %768 = vst [vmem:[%s1253_s15 + $0x68] sm:$0xff] %v752_v45 }
 0x172   : > { %769 = vst [vmem:[%s1253_s15 + $0x70] sm:$0xff] %v753_v48  ;;  %770 = vst [vmem:[%s1253_s15 + $0x78] sm:$0xff] %v754_v49 }
 0x173 PF: > { %s25_s7 = sadd.s32 1, %s1121_s7   ;;  %s1328_s1 = smov %s1101_s27 }
 0x174   : > { %p22_p11 = scmp.ge.s32.totalorder %s25_s7, 10   ;;  %s1329_s27 = smov %s1217_s26 }
 0x175   : > { %s1330_s28 = smov %s1113_s30  ;;  %s1331_s29 = smov %s1117_s6 }
 0x176   : > { %s1332_s30 = smov %s1335_s8  ;;  %s1333_s6 = smov %s1339_s9 }
 0x177   :  { %24 = sbr.rel (!%p22_p11) target bundleno = 29 (0x1d), region = 123 }

</bundles_post_ra>
